<compile_context>
chip_gen: v7x
topology: tpu7x:2x2x1
jax: 0.10.0
libtpu: 0.0.40
codegen_flags: <defaults>
</compile_context>

<pallas_src>
import functools

import jax
import jax.numpy as jnp
from jax.experimental import pallas as pl
from jax.experimental.pallas import tpu as pltpu

_OUT_SUB = 8     # per-tile partial output block: one full f32 vreg tile
_OUT_LANE = 128  # (lane-dense, unmasked stores)


def _ce_partial_kernel(logits_ref, labels_ref, out_ref, *,
                       n_total, tile_n, use_mxu_reduce):
    """Per-tile partial sum of per-row cross-entropy.

    logits_ref: (tile_n, C) f32/bf16 in VMEM
    labels_ref: (tile_n, 1) i32 in VMEM
    out_ref:    (8, 128)   f32 in VMEM (whole block holds the same partial sum)
    """
    logits = logits_ref[...].astype(jnp.float32)          # native-dtype HBM read, f32 math
    labels = labels_ref[...]                               # (tile_n, 1) i32
    tn, c = logits.shape

    # Numerically stable per-row softmax pieces.
    row_max = jnp.max(logits, axis=-1, keepdims=True)      # XLU lane reduce
    shifted = logits - row_max                              # VPU
    exp_s = jnp.exp(shifted)                                # EUP

    # Target-class gather as a select on the already-shifted logits (reuses
    # `shifted`; no one-hot multiply / cast, no 0 * -inf NaN hazard).
    class_ids = jax.lax.broadcasted_iota(jnp.int32, (tn, c), 1)
    masked = jnp.where(class_ids == labels, shifted, 0.0)

    if use_mxu_reduce:
        # Lane-sum reductions on the otherwise idle MXU (ones-vector matmul),
        # relieving the 4-wide VALU which binds for bf16 inputs.
        ones_rhs = jnp.ones((c, _OUT_LANE), jnp.float32)
        sum_exp = jnp.dot(exp_s, ones_rhs,
                          preferred_element_type=jnp.float32)[:, :1]
        tgt_shift = jnp.dot(masked, ones_rhs,
                            preferred_element_type=jnp.float32)[:, :1]
    else:
        sum_exp = jnp.sum(exp_s, axis=-1, keepdims=True)
        tgt_shift = jnp.sum(masked, axis=-1, keepdims=True)

    # ce = logsumexp(logits) - logits[label] = log(sum_exp) - (tgt - row_max)
    ce = jnp.log(sum_exp) - tgt_shift                       # (tile_n, 1)

    if n_total % tile_n == 0:
        partial = jnp.sum(ce)
    else:
        # Ragged last tile: rows >= N read uninitialized VMEM; mask their CE
        # (NaN/Inf in the unselected where branch does not propagate).
        i = pl.program_id(0)
        row_ids = i * tile_n + jax.lax.broadcasted_iota(jnp.int32, (tn, 1), 0)
        partial = jnp.sum(jnp.where(row_ids < n_total, ce, 0.0))

    out_ref[...] = jnp.broadcast_to(partial, out_ref.shape).astype(out_ref.dtype)


def _vmem_capacity_bytes():
    try:
        return int(pltpu.get_tpu_info().vmem_capacity_bytes)
    except Exception:
        return 64 << 20            # be conservative (v7x-sized VMEM)


def _choose_tile_n(n, c, itemsize, target_bytes):
    """Largest row tile under the per-buffer byte budget that still yields
    >= ~8 tiles when N allows, with an even tile count preferred (v7x TCs)."""
    sublane_mult = max(8, 32 // itemsize)          # f32 -> 8, bf16 -> 16, int8 -> 32
    row_bytes = c * itemsize + _OUT_LANE * 4       # logits row + lane-padded label row
    rows_budget = max(1, target_bytes // row_bytes)
    rows = min(rows_budget, max(1, n // 8))        # prefer >= 8 tiles
    rows = max(sublane_mult, (rows // sublane_mult) * sublane_mult)
    if rows >= n:
        return n                                   # N too small to split legally
    cand = rows
    for _ in range(8):                             # nudge toward an even tile count
        if pl.cdiv(n, cand) % 2 == 0:
            return cand
        cand -= sublane_mult
        if cand < sublane_mult:
            break
    return rows


def cross_entropy_mean(logits, labels, *, tile_n=None, use_mxu_reduce=None):
    """Mean CE (reduction='mean'); heavy lifting in a tiled Pallas kernel."""
    n, c = logits.shape
    itemsize = jnp.dtype(logits.dtype).itemsize

    vmem_cap = _vmem_capacity_bytes()
    # 2-4 MiB tiles already reach ~85% of HBM roofline; keep the smaller
    # budget on 64 MiB-VMEM parts (v7x), the larger on 128 MiB parts.
    target_bytes = (4 << 20) if vmem_cap >= (100 << 20) else (2 << 20)
    if tile_n is None:
        tile_n = _choose_tile_n(n, c, itemsize, target_bytes)
    num_tiles = pl.cdiv(n, tile_n)

    if use_mxu_reduce is None:
        # Only offload the lane reductions to the MXU while the (C, 128) f32
        # ones RHS stays small relative to the logits tile.
        use_mxu_reduce = c * _OUT_LANE * 4 <= (2 << 20)

    labels_2d = labels.astype(jnp.int32).reshape(n, 1)
    kernel = functools.partial(_ce_partial_kernel, n_total=n, tile_n=tile_n,
                               use_mxu_reduce=use_mxu_reduce)

    # VMEM footprint: double-buffered logits + lane-padded labels + outputs,
    # MXU ones RHS / matmul temps, plus headroom for the f32 intermediates.
    f32_tile = tile_n * c * 4
    io_bytes = (2 * (tile_n * c * itemsize + tile_n * _OUT_LANE * 4)
                + 2 * _OUT_SUB * _OUT_LANE * 4)
    mxu_bytes = (c + 2 * tile_n) * _OUT_LANE * 4 if use_mxu_reduce else 0
    vmem_limit = io_bytes + mxu_bytes + 3 * f32_tile + (4 << 20)
    vmem_limit = int(min(max(vmem_limit, 16 << 20), 48 << 20))

    out = pl.pallas_call(
        kernel,
        out_shape=jax.ShapeDtypeStruct((num_tiles * _OUT_SUB, _OUT_LANE), jnp.float32),
        grid_spec=pltpu.PrefetchScalarGridSpec(
            num_scalar_prefetch=0,
            grid=(num_tiles,),
            in_specs=[
                pl.BlockSpec((tile_n, c), lambda i: (i, 0)),   # logits tile (native dtype)
                pl.BlockSpec((tile_n, 1), lambda i: (i, 0)),   # labels tile
            ],
            out_specs=pl.BlockSpec((_OUT_SUB, _OUT_LANE), lambda i: (i, 0)),
        ),
        compiler_params=pltpu.CompilerParams(
            dimension_semantics=("parallel",),     # independent row tiles -> both v7x TCs
            vmem_limit_bytes=vmem_limit,           # derived from actual footprint
        ),
        cost_estimate=pl.CostEstimate(
            flops=8 * n * c,
            transcendentals=n * c + n,
            bytes_accessed=(n * c * itemsize + n * _OUT_LANE * 4
                            + num_tiles * _OUT_SUB * _OUT_LANE * 4),
        ),
    )(logits, labels_2d)

    partials = out.reshape(num_tiles, _OUT_SUB, _OUT_LANE)[:, 0, 0]   # (num_tiles,)
    return jnp.sum(partials) / jnp.float32(n)


def focal_loss(logits, labels, gamma=0.0, eps=1e-7, *, tile_n=None,
               use_mxu_reduce=None):
    """Faithful port of the reference FocalLoss.forward."""
    logp = cross_entropy_mean(logits, labels, tile_n=tile_n,
                              use_mxu_reduce=use_mxu_reduce)   # scalar mean CE
    p = jnp.exp(-logp)
    loss = (1.0 - p + eps) ** gamma * logp
    return jnp.mean(loss)                                      # .mean() on scalar


if __name__ == "__main__":
    key = jax.random.PRNGKey(0)
    k1, k2, k3, k4, k5, k6 = jax.random.split(key, 6)

    def ref_focal(lg, lb, gamma=0.0, eps=1e-7):
        lg = lg.astype(jnp.float32)
        logp = jnp.mean(jax.nn.logsumexp(lg, axis=-1) - lg[jnp.arange(lg.shape[0]), lb])
        p = jnp.exp(-logp)
        return (1.0 - p + eps) ** gamma * logp

    # 1) Small (batch, classes) consistent with 2-D CrossEntropyLoss input; f32,
    #    single full tile (N too small to split), MXU-reduce path.
    N, C = 8, 128
    logits = jax.random.normal(k1, (N, C), dtype=jnp.float32)
    labels = jax.random.randint(k2, (N,), 0, C, dtype=jnp.int32)
    loss = focal_loss(logits, labels, gamma=0.0, eps=1e-7)
    jax.block_until_ready(loss)
    assert jnp.allclose(loss, ref_focal(logits, labels), rtol=1e-5, atol=1e-5), (
        loss, ref_focal(logits, labels))

    # 2) bf16 inputs, explicit multi-tile grid with a ragged last tile (40 / 16).
    N2, C2 = 40, 256
    logits2 = jax.random.normal(k3, (N2, C2), dtype=jnp.float32).astype(jnp.bfloat16)
    labels2 = jax.random.randint(k4, (N2,), 0, C2, dtype=jnp.int32)
    loss2 = focal_loss(logits2, labels2, gamma=0.0, eps=1e-7, tile_n=16)
    jax.block_until_ready(loss2)
    assert jnp.allclose(loss2, ref_focal(logits2, labels2), rtol=1e-3, atol=1e-3), (
        loss2, ref_focal(logits2, labels2))

    # 3) Automatic tile policy (even multi-tile grid) on both reduce paths.
    N3, C3 = 512, 256
    logits3 = jax.random.normal(k5, (N3, C3), dtype=jnp.float32)
    labels3 = jax.random.randint(k6, (N3,), 0, C3, dtype=jnp.int32)
    loss3 = focal_loss(logits3, labels3)                           # MXU lane reductions
    loss3b = focal_loss(logits3, labels3, use_mxu_reduce=False)    # XLU/VPU reductions
    jax.block_until_ready((loss3, loss3b))
    ref3 = ref_focal(logits3, labels3)
    assert jnp.allclose(loss3, ref3, rtol=1e-5, atol=1e-5), (loss3, ref3)
    assert jnp.allclose(loss3b, ref3, rtol=1e-5, atol=1e-5), (loss3b, ref3)

    print("KERNEL_OK")
</pallas_src>

<mosaic_0001>
module attributes {stable_mosaic.version = 11 : i64} {
  func.func @_ce_partial_kernel(%arg0: i32, %arg1: memref<8x128xf32, #tpu.memory_space<vmem>>, %arg2: memref<8x1xi32, #tpu.memory_space<vmem>>, %arg3: memref<8x128xf32, #tpu.memory_space<vmem>>) attributes {dimension_semantics = [#tpu.dimension_semantics<parallel>], iteration_bounds = array<i64: 1>, scalar_prefetch = 0 : i64, scratch_operands = 0 : i64, tpu.core_type = #tpu.core_type<tc>, window_params = [{transform_indices = @transform_0, window_bounds = array<i64: 8, 128>}, {transform_indices = @transform_1, window_bounds = array<i64: 8, 1>}, {transform_indices = @transform_2, window_bounds = array<i64: 8, 128>}]} {
    %c0 = arith.constant 0 : index
    %c0_0 = arith.constant 0 : index
    %0 = vector.load %arg1[%c0, %c0_0] : memref<8x128xf32, #tpu.memory_space<vmem>>, vector<8x128xf32>
    %c0_1 = arith.constant 0 : index
    %c0_2 = arith.constant 0 : index
    %1 = vector.load %arg2[%c0_1, %c0_2] : memref<8x1xi32, #tpu.memory_space<vmem>>, vector<8x1xi32>
    %cst = arith.constant dense<0xFF800000> : vector<8xf32>
    %2 = vector.multi_reduction <maximumf>, %0, %cst [1] : vector<8x128xf32> to vector<8xf32>
    %3 = vector.shape_cast %2 : vector<8xf32> to vector<8x1xf32>
    %4 = vector.broadcast %3 : vector<8x1xf32> to vector<8x128xf32>
    %5 = arith.subf %0, %4 : vector<8x128xf32>
    %6 = math.exp %5 : vector<8x128xf32>
    %7 = tpu.iota {dimensions = array<i32: 1>} : vector<8x128xi32>
    %8 = vector.broadcast %1 : vector<8x1xi32> to vector<8x128xi32>
    %9 = arith.cmpi eq, %7, %8 : vector<8x128xi32>
    %cst_3 = arith.constant 0.000000e+00 : f32
    %10 = vector.broadcast %cst_3 : f32 to vector<8x128xf32>
    %11 = arith.select %9, %5, %10 : vector<8x128xi1>, vector<8x128xf32>
    %cst_4 = arith.constant 1.000000e+00 : f32
    %12 = vector.broadcast %cst_4 : f32 to vector<128x128xf32>
    %cst_5 = arith.constant dense<0.000000e+00> : vector<8x128xf32>
    %13 = tpu.matmul %6, %12, %cst_5 {dimension_numbers = #tpu.dot_dimension_numbers<[1], [0], [0], [1], [0, 0, 1, 1], [], []>} : vector<8x128xf32>, vector<128x128xf32>, vector<8x128xf32> -> vector<8x128xf32>
    %14 = vector.extract_strided_slice %13 {offsets = [0, 0], sizes = [8, 1], strides = [1, 1]} : vector<8x128xf32> to vector<8x1xf32>
    %cst_6 = arith.constant dense<0.000000e+00> : vector<8x128xf32>
    %15 = tpu.matmul %11, %12, %cst_6 {dimension_numbers = #tpu.dot_dimension_numbers<[1], [0], [0], [1], [0, 0, 1, 1], [], []>} : vector<8x128xf32>, vector<128x128xf32>, vector<8x128xf32> -> vector<8x128xf32>
    %16 = vector.extract_strided_slice %15 {offsets = [0, 0], sizes = [8, 1], strides = [1, 1]} : vector<8x128xf32> to vector<8x1xf32>
    %17 = math.log %14 : vector<8x1xf32>
    %18 = arith.subf %17, %16 : vector<8x1xf32>
    %19 = vector.shape_cast %18 : vector<8x1xf32> to vector<1x8x1xf32>
    %cst_7 = arith.constant dense<0.000000e+00> : vector<1xf32>
    %20 = vector.multi_reduction <add>, %19, %cst_7 [1, 2] : vector<1x8x1xf32> to vector<1xf32>
    %21 = vector.shape_cast %20 : vector<1xf32> to vector<1x1x1xf32>
    %22 = vector.extract %21[0, 0, 0] : f32 from vector<1x1x1xf32>
    %23 = vector.broadcast %22 : f32 to vector<8x128xf32>
    %c0_8 = arith.constant 0 : index
    %c0_9 = arith.constant 0 : index
    %24 = vector.load %arg3[%c0_8, %c0_9] : memref<8x128xf32, #tpu.memory_space<vmem>>, vector<8x128xf32>
    tpu.vector_store %arg3[%c0_8, %c0_9], %23 {strides = array<i32>} : memref<8x128xf32, #tpu.memory_space<vmem>>, vector<8x128xf32>,
    return
  }
  func.func @transform_0(%arg0: i32) -> (i32, i32) {
    %c0_i32 = arith.constant 0 : i32
    %c0_i32_0 = arith.constant 0 : i32
    return %arg0, %c0_i32 : i32, i32
  }
  func.func @transform_1(%arg0: i32) -> (i32, i32) {
    %c0_i32 = arith.constant 0 : i32
    %c0_i32_0 = arith.constant 0 : i32
    return %arg0, %c0_i32 : i32, i32
  }
  func.func @transform_2(%arg0: i32) -> (i32, i32) {
    %c0_i32 = arith.constant 0 : i32
    %c0_i32_0 = arith.constant 0 : i32
    return %arg0, %c0_i32 : i32, i32
  }
}

</mosaic_0001>

<bundles_post_ra>
// kernel: tpu_custom_call.1
= control target key start
LH: loop header
LB: loop body
LE: loop exit
PB: predicated region body
PF: predicated region fallthrough
CT: control target
= control target key end

     0   :  { %v370_v1 = vmov 0.0|0.0   ;;  %s409_s0 = inlined_call_operand.vmem [shape: f32[8,128], index: 0, kind: input, shape index: {}]   ;;  %s410_s1 = inlined_call_operand.vmem [shape: s32[8,1], index: 1, kind: input, shape index: {}]   ;;  %s411_s2 = inlined_call_operand.hbm [shape: f32[8,128], index: 2, kind: output, shape index: {}]  }
   0x1   :  { %v12_v0 = vld [vmem:[%s409_s0] sm:$0xff]  ;;  %317 = vmatprep.subr.bf16.mxu1 %v370_v1 }
   0x2   :  { %14 = vmax.xlane.f32.xlu0 %v12_v0 }
   0x3   :  { %7 = vsyncpa [#allocation3], 0  ;;  %v371_v2 = vmov 0   ;;  %v372_v3 = vmov 1.0|1.0   ;;  %301 = vmatprep.subr.bf16.mxu0 %v370_v1  ;;  %v13_v4 = vld [vmem:[%s410_s1] sm:$0xff]  ;;  %v19_v8 = vlaneseq }
   0x4   :  { %341 = vset.pattern.permute.xlu0 %v371_v2  ;;  %318 = vmatpush3.bf16.msra.mxu1 %v372_v3  ;;  %vm373_vm0 = vmmov 0   ;;  %v374_v5 = vmov 0.0   ;;  %vm169_vm2 = vcmask 7168   ;;  %s375_s1 = smov [#allocation2]  }
   0x5   :  { %319 = vmatprep.subr.bf16.mxu1 %v370_v1  ;;  %302 = vmatpush3.bf16.msra.mxu0 %v372_v3  ;;  %v20_v10 = vand.u32 127, %v19_v8  ;;  %s188_s12 = sshll.u32 %s375_s1, 4  ;;  %s189_s12 = int_to_ptr.vmem [resolvable:$true] %s188_s12 }
   0x6   :  { %303 = vmatprep.subr.bf16.mxu0 %v370_v1  ;;  %298 = vmatprep.mubr.msk.f32.mxu1 %vm373_vm0, %v374_v5  ;;  %s346_s14 = scalar_lea.vmem %s189_s12, 128  ;;  %p351_p1 = scmp.lt.s32.totalorder %s189_s12, %s189_s12 }
   0x7   :  { %263 = vmatprep.mubr.msk.f32.mxu0 %vm373_vm0, %v374_v5  ;;  %p347_p0 = scmp.ne.s32.totalorder %s189_s12, %s346_s14  ;;  %p352_p2 = scmp.lt.s32.totalorder %s346_s14, %s346_s14 }
   0x8   :  { %320 = vmatpush3.bf16.msra.mxu1 %v372_v3 }
   0x9   :  { %321 = vmatprep.subr.bf16.mxu1 %v370_v1  ;;  %304 = vmatpush3.bf16.msra.mxu0 %v372_v3  ;;  %p353_p3 = por %p352_p2, %p351_p1 }
   0xa   :  { %305 = vmatprep.subr.bf16.mxu0 %v370_v1 }
   0xb   :  { %p354_p4 = pnand %p353_p3, %p347_p0 }
   0xc   :  { %322 = vmatpush3.bf16.msra.mxu1 %v372_v3 }
   0xd   :  { %323 = vmatprep.subr.bf16.mxu1 %v370_v1  ;;  %306 = vmatpush3.bf16.msra.mxu0 %v372_v3 }
   0xe   :  { %307 = vmatprep.subr.bf16.mxu0 %v370_v1 }
  0x10   :  { %324 = vmatpush3.bf16.msra.mxu1 %v372_v3 }
  0x11   :  { %325 = vmatprep.subr.bf16.mxu1 %v370_v1  ;;  %308 = vmatpush3.bf16.msra.mxu0 %v372_v3 }
  0x12   :  { %309 = vmatprep.subr.bf16.mxu0 %v370_v1 }
  0x14   :  { %326 = vmatpush3.bf16.msra.mxu1 %v372_v3 }
  0x15   :  { %327 = vmatprep.subr.bf16.mxu1 %v370_v1  ;;  %310 = vmatpush3.bf16.msra.mxu0 %v372_v3 }
  0x16   :  { %311 = vmatprep.subr.bf16.mxu0 %v370_v1 }
  0x18   :  { %328 = vmatpush3.bf16.msra.mxu1 %v372_v3  ;;  %22 = vperm.xlu0 %341, %v13_v4  }
  0x19   :  { %329 = vmatprep.subr.bf16.mxu1 %v370_v1  ;;  %312 = vmatpush3.bf16.msra.mxu0 %v372_v3 }
  0x1a   :  { %313 = vmatprep.subr.bf16.mxu0 %v370_v1 }
  0x1c   :  { %330 = vmatpush3.bf16.msra.mxu1 %v372_v3 }
  0x1d   :  { %331 = vmatprep.subr.bf16.mxu1 %v370_v1  ;;  %314 = vmatpush3.bf16.msra.mxu0 %v372_v3 }
  0x1e   :  { %315 = vmatprep.subr.bf16.mxu0 %v370_v1 }
  0x20   :  { %332 = vmatpush3.bf16.msra.mxu1 %v372_v3 }
  0x21   :  { %316 = vmatpush3.bf16.msra.mxu0 %v372_v3 }
  0x8f   :  { %v15_v6 = vpop.xlane.xlu0 %14 }
  0x90   :  { %v16_v7 = vsub.f32 %v12_v0, %v15_v6 }
  0x92   :  { %v17_v9 = vmul.f32 1.442695, %v16_v7 }
  0x94   :  { %342 = vpow2.f32 %v17_v9 }
  0x97   :  { %v23_v11 = vpop.permute.xlu0 %22 }
  0x98   :  { %vm24_vm1 = vcmp.eq.s32.totalorder %v20_v10, %v23_v11 }
  0x99   :  { %299 = vmatmul.mubr.msk.f32.vlgmr.msra.gmra.mrb[0].mxu1 %vm24_vm1, %v16_v7 }
  0x9e   :  { %v343_v12 = vpop.eup %342 }
  0x9f   :  { %264 = vmatmul.mubr.f32.vlgmr.msra.gmra.mrb[0].mxu0 %v343_v12 }
 0x16c   :  { %v162_v13 = vpop.f32.mrb[0].mxu1 }
 0x16d   :  { %v300_v14 = vpop.f32.mrb[1].mxu1 }
 0x172   :  { %v92_v15 = vpop.f32.mrb[0].mxu0 }
 0x173   :  { %344 = vlog2.f32 %v92_v15  ;;  %v265_v16 = vpop.f32.mrb[1].mxu0 }
 0x17d   :  { %v345_v17 = vpop.eup %344 }
 0x17e   :  { %v167_v18 = vmul.f32 0.6931472, %v345_v17 }
 0x180   :  { %v168_v19 = vsub.f32 %v167_v18, %v162_v13 }
 0x182   :  { %v170_v20 = vsel %vm169_vm2, %v168_v19, 0.0 }
 0x183   :  { %171 = vadd.xlane.f32.xlu1 %v170_v20 }
 0x210   :  { %v172_v21 = vpop.xlane.xlu1 %171 }
 0x211   :  { %v173_v22 = vrot.slane %v172_v21, 4 }
 0x213   :  { %v174_v23 = vadd.f32 %v173_v22, %v172_v21 }
 0x215   :  { %v175_v24 = vrot.slane %v174_v23, 2 }
 0x217   :  { %v176_v25 = vadd.f32 %v175_v24, %v174_v23 }
 0x219   :  { %v177_v26 = vrot.slane %v176_v25, 1 }
 0x21b   :  { %v178_v27 = vadd.f32 %v177_v26, %v176_v25 }
 0x21d   :  { %333 = vpush %v178_v27 }
 0x24e   :  { %s334_s13 = spop %333 }
 0x24f   :  { %v180_v28 = vstv %s334_s13 }
 0x250   :  { %181 = vst [vmem:[#allocation2] sm:$0xff] %v180_v28 }
 0x251   :  { %357 = shalt.err (!%p354_p4)
}
 0x252   :  { %s358_s17 = scalar_lea.hbm %s411_s2, 128 }
 0x253   :  { %p359_p5 = scmp.ne.s32.totalorder %s411_s2, %s358_s17  ;;  %p362_p6 = scmp.lt.u32.totalorder %s358_s17, %s411_s2 }
 0x255   :  { %p364_p7 = pnand %p362_p6, %p359_p5 }
 0x257   :  { %367 = shalt.err (!%p364_p7)
}
 0x258   :  { %191 = dma.vmem_to_hbm [thread:$0]  %s189_s12, 128, %s411_s2, [#allocation3]  }
 0x259   :  { %368 = dma.done.wait [#allocation3], 128  }
 0x25a   :  { %369 = vsyncadd [#allocation3], 4294967168 }
 0x25b   :  { %195 = vsyncpa [#allocation3], 1 }

</bundles_post_ra>
